<compile_context>
chip_gen: v7x
topology: tpu7x:2x2x1
jax: 0.10.0
libtpu: 0.0.40
codegen_flags: <defaults>
</compile_context>

<pallas_src>
import math

import numpy as np
import jax
import jax.numpy as jnp
from jax import lax
from jax.experimental import pallas as pl
from jax.experimental.pallas import tpu as pltpu


# ---------------------------------------------------------------------------
# Kernel A: one (phase, P-tile) grid step = sub-kernel GEMM on the MXU plus
# per-tile partial BatchNorm statistics.
#   w_ref     : (Cout, Kred)  bf16   sub-kernel of this phase
#   cols_ref  : (Kred, TP)    bf16   polyphase im2col columns of this tile
#   y_ref     : (Cout, TP)    f32    conv output tile (lane-dense on TP)
#   sum_ref   : (Cout, 1)     f32    per-tile  sum_j y[c, j]
#   sumsq_ref : (Cout, 1)     f32    per-tile  sum_j y[c, j]^2
# ---------------------------------------------------------------------------
def _gemm_stats_kernel(w_ref, cols_ref, y_ref, sum_ref, sumsq_ref):
    y = jnp.dot(w_ref[...], cols_ref[...], preferred_element_type=jnp.float32)
    y_ref[...] = y
    sum_ref[...] = jnp.sum(y, axis=1, keepdims=True)
    sumsq_ref[...] = jnp.sum(y * y, axis=1, keepdims=True)


# ---------------------------------------------------------------------------
# Kernel B: folded BatchNorm (per-channel scale/shift) + ReLU on a (Cout, TP)
# tile.  scale/shift are (Cout, 1) and broadcast along the lane axis.
# ---------------------------------------------------------------------------
def _bn_relu_kernel(y_ref, scale_ref, shift_ref, out_ref):
    out_ref[...] = jnp.maximum(y_ref[...] * scale_ref[...] + shift_ref[...],
                               0.0)


def conv_trans_block(x_nchw, weight, bias, gamma, beta,
                     stride, padding, output_padding,
                     eps=1e-5, tile_p=256):
    """Forward pass of convTransBlock (ConvTranspose2d + training-mode BN + ReLU).

    x_nchw : (N, Cin, H, W) float32
    weight : (Cin, Cout, K, K)   (PyTorch ConvTranspose2d layout)
    bias   : (Cout,)  -- accepted for API parity; it cancels exactly under
                         training-mode BatchNorm and is therefore unused.
    gamma, beta : (Cout,)  BatchNorm affine parameters.
    tile_p : lane-tile width (multiple of 128; use 512-2048 for large outputs).
    returns: (N, Cout, OH, OW) float32
    """
    del bias  # (y + b) - mean(y + b) == y - mean(y): exact cancellation in BN.

    Cin, Cout, K, _ = weight.shape
    N, _, H, W = x_nchw.shape
    s, p, op = stride, padding, output_padding
    OH = (H - 1) * s - 2 * p + K + op
    OW = (W - 1) * s - 2 * p + K + op
    assert tile_p % 128 == 0, "tile_p must be a multiple of 128 lanes"
    if OH % s or OW % s:
        # TODO(synk): unequal per-phase column counts (OH/OW not divisible by
        # the stride) need ragged per-phase handling; not required here.
        raise NotImplementedError("output size must be divisible by stride")

    s2 = s * s
    Kc = -(-K // s)                      # ceil(K / s): sub-kernel extent
    nh, nw = OH // s, OW // s            # per-phase output grid
    Pp = N * nh * nw                     # columns per phase
    Kred = Kc * Kc * Cin                 # contraction depth per phase

    # --- polyphase gather: taps are shifted windows of the (padded) input ---
    x_nhwc = jnp.transpose(x_nchw, (0, 2, 3, 1)).astype(jnp.float32)
    pad_lo = Kc - 1                      # always >= 0 (robust for any padding)
    q0 = [(r + p) // s for r in range(s)]          # coarse offset per residue
    pad_hi_h = max(0, max(q0) + nh - H)
    pad_hi_w = max(0, max(q0) + nw - W)
    x_ext = jnp.pad(x_nhwc, ((0, 0), (pad_lo, pad_hi_h),
                             (pad_lo, pad_hi_w), (0, 0)))

    cols_phases, w_phases = [], []
    for rh in range(s):                            # output-row residue
        a = (rh + p) % s
        for rw in range(s):                        # output-col residue
            b = (rw + p) % s
            taps, wrows = [], []
            for m in range(Kc):
                for mp in range(Kc):
                    h0 = pad_lo + q0[rh] - m
                    w0 = pad_lo + q0[rw] - mp
                    win = x_ext[:, h0:h0 + nh, w0:w0 + nw, :]    # (N,nh,nw,Cin)
                    taps.append(
                        jnp.transpose(win, (3, 0, 1, 2)).reshape(Cin, Pp))
                    kh, kw = a + s * m, b + s * mp
                    if kh < K and kw < K:
                        wrows.append(weight[:, :, kh, kw].astype(jnp.float32))
                    else:                          # zero-padded sub-kernel tap
                        wrows.append(jnp.zeros((Cin, Cout), jnp.float32))
            cols_phases.append(jnp.concatenate(taps, axis=0))    # (Kred, Pp)
            w_phases.append(jnp.concatenate(wrows, axis=0).T)    # (Cout, Kred)
    cols = jnp.stack(cols_phases, axis=0)                        # (s2,Kred,Pp)
    w_all = jnp.stack(w_phases, axis=0)                          # (s2,Cout,Kred)

    # --- pad to TPU-friendly extents; zero padding is exact for the GEMM ----
    kred_pad = -(-Kred // 16) * 16                 # bf16 sublane packing = 16
    pp_pad = -(-Pp // tile_p) * tile_p
    n_tiles = pp_pad // tile_p
    cols = jnp.pad(cols, ((0, 0), (0, kred_pad - Kred), (0, pp_pad - Pp)))
    w_all = jnp.pad(w_all, ((0, 0), (0, 0), (0, kred_pad - Kred)))
    cols = cols.astype(jnp.bfloat16)               # MXU inputs; f32 accumulate
    w_all = w_all.astype(jnp.bfloat16)

    cparams = pltpu.CompilerParams(
        dimension_semantics=("parallel", "parallel"),   # megacore on v7x
        vmem_limit_bytes=32 * 1024 * 1024)              # safe on v5e/v6e/v7x

    # --- pass 1: per-(phase, P-tile) GEMM + partial BN statistics -----------
    y, psum, psumsq = pl.pallas_call(
        _gemm_stats_kernel,
        grid=(s2, n_tiles),
        in_specs=[
            pl.BlockSpec((None, Cout, kred_pad), lambda ph, t: (ph, 0, 0)),
            pl.BlockSpec((None, kred_pad, tile_p), lambda ph, t: (ph, 0, t)),
        ],
        out_specs=(
            pl.BlockSpec((None, Cout, tile_p), lambda ph, t: (ph, 0, t)),
            pl.BlockSpec((None, None, Cout, 1), lambda ph, t: (ph, t, 0, 0)),
            pl.BlockSpec((None, None, Cout, 1), lambda ph, t: (ph, t, 0, 0)),
        ),
        out_shape=(
            jax.ShapeDtypeStruct((s2, Cout, pp_pad), jnp.float32),
            jax.ShapeDtypeStruct((s2, n_tiles, Cout, 1), jnp.float32),
            jax.ShapeDtypeStruct((s2, n_tiles, Cout, 1), jnp.float32),
        ),
        compiler_params=cparams,
    )(w_all, cols)

    # --- finish the BN statistics (tiny) and fold into scale/shift ----------
    # Zero-padded columns contribute 0 to both sums; divide by the true count.
    count = float(N * OH * OW)
    sum_c = jnp.sum(psum, axis=(0, 1)).reshape(Cout)
    sumsq_c = jnp.sum(psumsq, axis=(0, 1)).reshape(Cout)
    mean = sum_c / count
    var = sumsq_c / count - mean * mean            # biased variance (training)
    # TODO(synk): for very large N*OH*OW use a shifted / Welford accumulation
    # to avoid cancellation in E[y^2] - E[y]^2.
    inv = lax.rsqrt(var + eps)
    g = gamma.astype(jnp.float32) * inv
    scale = g.reshape(Cout, 1)
    shift = (beta.astype(jnp.float32) - mean * g).reshape(Cout, 1)

    # --- pass 2: normalize + ReLU --------------------------------------------
    z = pl.pallas_call(
        _bn_relu_kernel,
        grid=(s2, n_tiles),
        in_specs=[
            pl.BlockSpec((None, Cout, tile_p), lambda ph, t: (ph, 0, t)),
            pl.BlockSpec((Cout, 1), lambda ph, t: (0, 0)),
            pl.BlockSpec((Cout, 1), lambda ph, t: (0, 0)),
        ],
        out_specs=pl.BlockSpec((None, Cout, tile_p), lambda ph, t: (ph, 0, t)),
        out_shape=jax.ShapeDtypeStruct((s2, Cout, pp_pad), jnp.float32),
        compiler_params=cparams,
    )(y, scale, shift)

    # --- interleave the s*s phases back into (N, Cout, OH, OW) ---------------
    z = z[:, :, :Pp].reshape(s, s, Cout, N, nh, nw)
    return jnp.transpose(z, (3, 2, 4, 0, 5, 1)).reshape(N, Cout, OH, OW)


# ---------------------------------------------------------------------------
# Pure-JAX reference (correctness check only).  Conv inputs are rounded to
# bf16 exactly like the kernel's MXU inputs, so the comparison isolates kernel
# correctness from that intentional cast; the bias is KEPT here to demonstrate
# that dropping it inside the kernel is exact under training-mode BN.
# ---------------------------------------------------------------------------
def _reference(x_nchw, weight, bias, gamma, beta, s, p, op, eps=1e-5):
    Cin, Cout, K, _ = weight.shape
    xq = x_nchw.astype(jnp.bfloat16).astype(jnp.float32)
    wq = weight.astype(jnp.bfloat16).astype(jnp.float32)
    w_oihw = jnp.transpose(wq[:, :, ::-1, ::-1], (1, 0, 2, 3))
    lo, hi = K - 1 - p, K - 1 - p + op
    y = lax.conv_general_dilated(
        xq, w_oihw, window_strides=(1, 1), padding=[(lo, hi), (lo, hi)],
        lhs_dilation=(s, s), dimension_numbers=('NCHW', 'OIHW', 'NCHW'),
        precision=lax.Precision.HIGHEST)
    y = y + bias.reshape(1, Cout, 1, 1)
    mean = jnp.mean(y, axis=(0, 2, 3), keepdims=True)
    var = jnp.mean((y - mean) ** 2, axis=(0, 2, 3), keepdims=True)
    y = (y - mean) * lax.rsqrt(var + eps)
    y = y * gamma.reshape(1, Cout, 1, 1) + beta.reshape(1, Cout, 1, 1)
    return jnp.maximum(y, 0.0)


if __name__ == "__main__":
    # convTransBlock(in_channels=4, out_channels=8, kernel_size=3,
    #                stride=2, padding=1, output_padding=1)
    N, Cin, H, W = 2, 4, 16, 16
    Cout, K, s, p, op = 8, 3, 2, 1, 1

    key = jax.random.PRNGKey(0)
    kx, kw, kb = jax.random.split(key, 3)
    x = jax.random.normal(kx, (N, Cin, H, W), jnp.float32)

    # Deterministic synthetic parameters (nn.ConvTranspose2d / BatchNorm2d
    # default shapes; values are synthetic, not a checkpoint).
    bound = 1.0 / math.sqrt(Cin * K * K)
    weight = jax.random.uniform(kw, (Cin, Cout, K, K), jnp.float32, -bound, bound)
    bias = jax.random.uniform(kb, (Cout,), jnp.float32, -bound, bound)
    gamma = jnp.ones((Cout,), jnp.float32)     # BatchNorm2d default weight
    beta = jnp.zeros((Cout,), jnp.float32)     # BatchNorm2d default bias

    fwd = jax.jit(conv_trans_block, static_argnums=(5, 6, 7))
    out = jax.block_until_ready(fwd(x, weight, bias, gamma, beta, s, p, op))

    assert out.shape == (N, Cout, 2 * H, 2 * W), out.shape
    ref = _reference(x, weight, bias, gamma, beta, s, p, op)
    np.testing.assert_allclose(np.asarray(out), np.asarray(ref),
                               rtol=1e-3, atol=1e-3)
    print("KERNEL_OK")
</pallas_src>

<mosaic_0001>
module attributes {stable_mosaic.version = 11 : i64} {
  func.func @_gemm_stats_kernel(%arg0: i32, %arg1: i32, %arg2: memref<1x8x16xbf16, #tpu.memory_space<vmem>>, %arg3: memref<1x16x256xbf16, #tpu.memory_space<vmem>>, %arg4: memref<1x8x256xf32, #tpu.memory_space<vmem>>, %arg5: memref<1x1x8x1xf32, #tpu.memory_space<vmem>>, %arg6: memref<1x1x8x1xf32, #tpu.memory_space<vmem>>) attributes {dimension_semantics = [#tpu.dimension_semantics<parallel>, #tpu.dimension_semantics<parallel>], iteration_bounds = array<i64: 4, 2>, scalar_prefetch = 0 : i64, scratch_operands = 0 : i64, tpu.core_type = #tpu.core_type<tc>, window_params = [{transform_indices = @transform_0, window_bounds = array<i64: 1, 8, 16>}, {transform_indices = @transform_1, window_bounds = array<i64: 1, 16, 256>}, {transform_indices = @transform_2, window_bounds = array<i64: 1, 8, 256>}, {transform_indices = @transform_3, window_bounds = array<i64: 1, 1, 8, 1>}, {transform_indices = @transform_4, window_bounds = array<i64: 1, 1, 8, 1>}]} {
    %c0 = arith.constant 0 : index
    %c0_0 = arith.constant 0 : index
    %c0_1 = arith.constant 0 : index
    %0 = vector.load %arg2[%c0, %c0_0, %c0_1] : memref<1x8x16xbf16, #tpu.memory_space<vmem>>, vector<1x8x16xbf16>
    %1 = vector.shape_cast %0 : vector<1x8x16xbf16> to vector<8x16xbf16>
    %c0_2 = arith.constant 0 : index
    %c0_3 = arith.constant 0 : index
    %c0_4 = arith.constant 0 : index
    %2 = vector.load %arg3[%c0_2, %c0_3, %c0_4] : memref<1x16x256xbf16, #tpu.memory_space<vmem>>, vector<1x16x256xbf16>
    %3 = vector.shape_cast %2 : vector<1x16x256xbf16> to vector<16x256xbf16>
    %cst = arith.constant dense<0.000000e+00> : vector<8x256xf32>
    %4 = tpu.matmul %1, %3, %cst {dimension_numbers = #tpu.dot_dimension_numbers<[1], [0], [0], [1], [0, 0, 1, 1], [], []>} : vector<8x16xbf16>, vector<16x256xbf16>, vector<8x256xf32> -> vector<8x256xf32>
    %c0_5 = arith.constant 0 : index
    %c0_6 = arith.constant 0 : index
    %c0_7 = arith.constant 0 : index
    %5 = vector.load %arg4[%c0_5, %c0_6, %c0_7] : memref<1x8x256xf32, #tpu.memory_space<vmem>>, vector<1x8x256xf32>
    %6 = vector.shape_cast %5 : vector<1x8x256xf32> to vector<8x256xf32>
    %7 = vector.shape_cast %4 : vector<8x256xf32> to vector<1x8x256xf32>
    tpu.vector_store %arg4[%c0_5, %c0_6, %c0_7], %7 {strides = array<i32>} : memref<1x8x256xf32, #tpu.memory_space<vmem>>, vector<1x8x256xf32>,
    %cst_8 = arith.constant dense<0.000000e+00> : vector<8xf32>
    %8 = vector.multi_reduction <add>, %4, %cst_8 [1] : vector<8x256xf32> to vector<8xf32>
    %9 = vector.shape_cast %8 : vector<8xf32> to vector<8x1xf32>
    %c0_9 = arith.constant 0 : index
    %c0_10 = arith.constant 0 : index
    %c0_11 = arith.constant 0 : index
    %c0_12 = arith.constant 0 : index
    %10 = vector.load %arg5[%c0_9, %c0_10, %c0_11, %c0_12] : memref<1x1x8x1xf32, #tpu.memory_space<vmem>>, vector<1x1x8x1xf32>
    %11 = vector.shape_cast %10 : vector<1x1x8x1xf32> to vector<8x1xf32>
    %12 = vector.shape_cast %9 : vector<8x1xf32> to vector<1x1x8x1xf32>
    tpu.vector_store %arg5[%c0_9, %c0_10, %c0_11, %c0_12], %12 {strides = array<i32>} : memref<1x1x8x1xf32, #tpu.memory_space<vmem>>, vector<1x1x8x1xf32>,
    %13 = arith.mulf %4, %4 : vector<8x256xf32>
    %cst_13 = arith.constant dense<0.000000e+00> : vector<8xf32>
    %14 = vector.multi_reduction <add>, %13, %cst_13 [1] : vector<8x256xf32> to vector<8xf32>
    %15 = vector.shape_cast %14 : vector<8xf32> to vector<8x1xf32>
    %c0_14 = arith.constant 0 : index
    %c0_15 = arith.constant 0 : index
    %c0_16 = arith.constant 0 : index
    %c0_17 = arith.constant 0 : index
    %16 = vector.load %arg6[%c0_14, %c0_15, %c0_16, %c0_17] : memref<1x1x8x1xf32, #tpu.memory_space<vmem>>, vector<1x1x8x1xf32>
    %17 = vector.shape_cast %16 : vector<1x1x8x1xf32> to vector<8x1xf32>
    %18 = vector.shape_cast %15 : vector<8x1xf32> to vector<1x1x8x1xf32>
    tpu.vector_store %arg6[%c0_14, %c0_15, %c0_16, %c0_17], %18 {strides = array<i32>} : memref<1x1x8x1xf32, #tpu.memory_space<vmem>>, vector<1x1x8x1xf32>,
    return
  }
  func.func @transform_0(%arg0: i32, %arg1: i32) -> (i32, i32, i32) {
    %c0_i32 = arith.constant 0 : i32
    %c0_i32_0 = arith.constant 0 : i32
    %c0_i32_1 = arith.constant 0 : i32
    return %arg0, %c0_i32, %c0_i32_0 : i32, i32, i32
  }
  func.func @transform_1(%arg0: i32, %arg1: i32) -> (i32, i32, i32) {
    %c0_i32 = arith.constant 0 : i32
    %c0_i32_0 = arith.constant 0 : i32
    return %arg0, %c0_i32, %arg1 : i32, i32, i32
  }
  func.func @transform_2(%arg0: i32, %arg1: i32) -> (i32, i32, i32) {
    %c0_i32 = arith.constant 0 : i32
    %c0_i32_0 = arith.constant 0 : i32
    return %arg0, %c0_i32, %arg1 : i32, i32, i32
  }
  func.func @transform_3(%arg0: i32, %arg1: i32) -> (i32, i32, i32, i32) {
    %c0_i32 = arith.constant 0 : i32
    %c0_i32_0 = arith.constant 0 : i32
    %c0_i32_1 = arith.constant 0 : i32
    return %arg0, %arg1, %c0_i32, %c0_i32_0 : i32, i32, i32, i32
  }
  func.func @transform_4(%arg0: i32, %arg1: i32) -> (i32, i32, i32, i32) {
    %c0_i32 = arith.constant 0 : i32
    %c0_i32_0 = arith.constant 0 : i32
    %c0_i32_1 = arith.constant 0 : i32
    return %arg0, %arg1, %c0_i32, %c0_i32_0 : i32, i32, i32, i32
  }
}

module attributes {stable_mosaic.version = 11 : i64} {
  func.func @_bn_relu_kernel(%arg0: i32, %arg1: i32, %arg2: memref<1x8x256xf32, #tpu.memory_space<vmem>>, %arg3: memref<8x1xf32, #tpu.memory_space<vmem>>, %arg4: memref<8x1xf32, #tpu.memory_space<vmem>>, %arg5: memref<1x8x256xf32, #tpu.memory_space<vmem>>) attributes {dimension_semantics = [#tpu.dimension_semantics<parallel>, #tpu.dimension_semantics<parallel>], iteration_bounds = array<i64: 4, 2>, scalar_prefetch = 0 : i64, scratch_operands = 0 : i64, tpu.core_type = #tpu.core_type<tc>, window_params = [{transform_indices = @transform_0, window_bounds = array<i64: 1, 8, 256>}, {pipeline_mode = #tpu.pipeline_mode<synchronous>, transform_indices = @transform_1, window_bounds = array<i64: 8, 1>}, {pipeline_mode = #tpu.pipeline_mode<synchronous>, transform_indices = @transform_2, window_bounds = array<i64: 8, 1>}, {transform_indices = @transform_3, window_bounds = array<i64: 1, 8, 256>}]} {
    %c0 = arith.constant 0 : index
    %c0_0 = arith.constant 0 : index
    %c0_1 = arith.constant 0 : index
    %0 = vector.load %arg2[%c0, %c0_0, %c0_1] : memref<1x8x256xf32, #tpu.memory_space<vmem>>, vector<1x8x256xf32>
    %1 = vector.shape_cast %0 : vector<1x8x256xf32> to vector<8x256xf32>
    %c0_2 = arith.constant 0 : index
    %c0_3 = arith.constant 0 : index
    %2 = vector.load %arg3[%c0_2, %c0_3] : memref<8x1xf32, #tpu.memory_space<vmem>>, vector<8x1xf32>
    %3 = vector.broadcast %2 : vector<8x1xf32> to vector<8x256xf32>
    %4 = arith.mulf %1, %3 : vector<8x256xf32>
    %c0_4 = arith.constant 0 : index
    %c0_5 = arith.constant 0 : index
    %5 = vector.load %arg4[%c0_4, %c0_5] : memref<8x1xf32, #tpu.memory_space<vmem>>, vector<8x1xf32>
    %6 = vector.broadcast %5 : vector<8x1xf32> to vector<8x256xf32>
    %7 = arith.addf %4, %6 : vector<8x256xf32>
    %cst = arith.constant 0.000000e+00 : f32
    %8 = vector.broadcast %cst : f32 to vector<8x256xf32>
    %9 = arith.maximumf %7, %8 : vector<8x256xf32>
    %c0_6 = arith.constant 0 : index
    %c0_7 = arith.constant 0 : index
    %c0_8 = arith.constant 0 : index
    %10 = vector.load %arg5[%c0_6, %c0_7, %c0_8] : memref<1x8x256xf32, #tpu.memory_space<vmem>>, vector<1x8x256xf32>
    %11 = vector.shape_cast %10 : vector<1x8x256xf32> to vector<8x256xf32>
    %12 = vector.shape_cast %9 : vector<8x256xf32> to vector<1x8x256xf32>
    tpu.vector_store %arg5[%c0_6, %c0_7, %c0_8], %12 {strides = array<i32>} : memref<1x8x256xf32, #tpu.memory_space<vmem>>, vector<1x8x256xf32>,
    return
  }
  func.func @transform_0(%arg0: i32, %arg1: i32) -> (i32, i32, i32) {
    %c0_i32 = arith.constant 0 : i32
    %c0_i32_0 = arith.constant 0 : i32
    return %arg0, %c0_i32, %arg1 : i32, i32, i32
  }
  func.func @transform_1(%arg0: i32, %arg1: i32) -> (i32, i32) {
    %c0_i32 = arith.constant 0 : i32
    %c0_i32_0 = arith.constant 0 : i32
    %c0_i32_1 = arith.constant 0 : i32
    return %c0_i32, %c0_i32_0 : i32, i32
  }
  func.func @transform_2(%arg0: i32, %arg1: i32) -> (i32, i32) {
    %c0_i32 = arith.constant 0 : i32
    %c0_i32_0 = arith.constant 0 : i32
    %c0_i32_1 = arith.constant 0 : i32
    return %c0_i32, %c0_i32_0 : i32, i32
  }
  func.func @transform_3(%arg0: i32, %arg1: i32) -> (i32, i32, i32) {
    %c0_i32 = arith.constant 0 : i32
    %c0_i32_0 = arith.constant 0 : i32
    return %arg0, %c0_i32, %arg1 : i32, i32, i32
  }
}

</mosaic_0001>

<bundles_post_ra>
// kernel: conv_trans_block.2
= control target key start
LH: loop header
LB: loop body
LE: loop exit
PB: predicated region body
PF: predicated region fallthrough
CT: control target
= control target key end

     0   :  { %s759_s15 = smov 0   ;;  %s761_s16 = smov 0   ;;  %s864_s0 = inlined_call_operand.vmem [shape: bf16[4,8,16], index: 0, kind: input, shape index: {}]   ;;  %s865_s1 = inlined_call_operand.vmem [shape: bf16[4,16,512], index: 1, kind: input, shape index: {}]   ;;  %s866_s2 = inlined_call_operand.vmem [shape: f32[4,8,512], index: 2, kind: output, shape index: {0}]   ;;  %s867_s3 = inlined_call_operand.vmem [shape: f32[4,2,8,1], index: 3, kind: output, shape index: {1}]   ;;  %s868_s4 = inlined_call_operand.vmem [shape: f32[4,2,8,1], index: 4, kind: output, shape index: {2}]  }
   0x1   :  { %s763_s17 = smov 0   ;;  %s765_s18 = smov 0  }
   0x2   :  { %s767_s19 = smov 0   ;;  %s769_s20 = smov 0  }
   0x3   :  { %s771_s21 = smov 0  }
   0x4 LB: > { %s24_s22 = sadd.s32 1, %s723_s19  ;;  %s27_s23 = sadd.s32 1, %s727_s20  ;;  %s731_s21 = sphi %s771_s21, %s15_s21   ;;  %s727_s20 = sphi %s769_s20, %s874_s20   ;;  %s723_s19 = sphi %s767_s19, %s873_s19   ;;  %s719_s18 = sphi %s765_s18, %s872_s18   ;;  %s715_s17 = sphi %s763_s17, %s871_s17   ;;  %s711_s16 = sphi %s761_s16, %s870_s16   ;;  %s707_s15 = sphi %s759_s15, %s869_s15  }
   0x5   : > { %p25_p0 = scmp.ge.s32.totalorder %s24_s22, 2  ;;  %p69_p1 = scmp.ne.s32.totalorder %s711_s16, %s707_s15 }
   0x6   : > { %p70_p2 = scmp.eq.s32.totalorder %s731_s21, 0  ;;  %s62_s27 = sadd.s32 1, %s711_s16 }
   0x7   : > { %s876_s22 = smov (%p25_p0, %s24_s22), 0  ;;  %s878_s23 = smov (!%p25_p0, %s27_s23), %s727_s20 }
   0x8   : > { %p71_p3 = por %p70_p2, %p69_p1  ;;  %p29_p4 = scmp.ge.s32.totalorder %s878_s23, 4 }
   0x9   : > { %s58_s24 = ssub.s32 %s723_s19, %s876_s22  ;;  %p597_p6 = scmp.ge.s32.totalorder %s731_s21, 8 }
   0xa   : > { %s880_s23 = smov (%p29_p4, %s878_s23), 0 }
   0xb   : > { %s57_s25 = ssub.s32 %s727_s20, %s880_s23  ;;  %179 = sbr.rel (%p597_p6) target bundleno = 26 (0x1a), region = 16 }
   0xc   : > { %s59_s26 = sor.u32 %s58_s24, %s57_s25 }
   0xd   : > { %p60_p5 = scmp.eq.s32.totalorder %s59_s26, 0 }
   0xf   : > { %s810_s28 = scalar_select %p60_p5, %s711_s16, %s62_s27  }
  0x12   : > { %189 = sbr.rel (!%p71_p3) target bundleno = 26 (0x1a), region = 24  ;;  %s191_s29 = sand.u32 (%p71_p3), 1, %s711_s16  }
  0x13   : > { %s599_s30 = sshll.u32 (%p71_p3), %s723_s19, 1  ;;  %s598_s5 = sshll.u32 (%p71_p3), %s191_s29, 4 }
  0x14   : > { %s600_s6 = sshll.u32 (%p71_p3), %s727_s20, 3  ;;  %s193_s12 = scalar_lea.vmem (%p71_p3), [#allocation2], %s598_s5 }
  0x15   : > { %s196_s7 = sadd.s32 (%p71_p3), %s600_s6, %s599_s30 }
  0x16   : > { %s601_s8 = sshll.u32 (%p71_p3), %s196_s7, 2 }
  0x17   : > { %s198_s11 = scalar_lea.vmem (%p71_p3), %s865_s1, %s601_s8 }
  0x18   : > { %v228_v0 = vld [vmem:[%s198_s11] sm:$0xff] (%p71_p3)  ;;  %v230_v1 = vld [vmem:[%s198_s11 + $0x10] sm:$0xff] (%p71_p3) }
  0x19   : > { %229 = vst [vmem:[%s193_s12] sm:$0xff] %v228_v0  ;;  %231 = vst [vmem:[%s193_s12 + $0x8] sm:$0xff] %v230_v1 }
  0x1a PF: > { %p602_p7 = scmp.ge.s32.totalorder %s731_s21, 1  ;;  %p236_p8 = scmp.lt.s32.totalorder %s731_s21, 9 }
  0x1c   : > { %p237_p9 = pnand %p602_p7, %p236_p8 }
  0x1d   : > { %s243_s13 = sand.u32 (!%p237_p9), 1, %s707_s15   ;;  %p292_p10 = scmp.lt.s32.totalorder (!%p237_p9), %s719_s18, 3  ;;  %v733_v2 = vmov (!%p237_p9), 0   ;;  %vm337_vm0 = vcmask (!%p237_p9), 130048   ;;  %vm387_vm1 = vcmask (!%p237_p9), 7168  }
  0x1e   : > { %240 = sbr.rel (%p237_p9) target bundleno = 403 (0x193), region = 62  ;;  %s603_s14 = sshll.u32 (!%p237_p9), %s243_s13, 4  ;;  %373 = vmatprep.mubr.bf16.mxu0 (!%p237_p9), %v733_v2 }
  0x1f   : > { %s245_s24 = scalar_lea.vmem (!%p237_p9), [#allocation2], %s603_s14  ;;  %s605_s15 = sshll.u32 (!%p237_p9), %s715_s17, 1 }
  0x20   : > { %v674_v3 = vld [vmem:[%s245_s24 + $0x4] ss:$8 sps:$4 sm:$0xff] (!%p237_p9)   ;;  %v676_v4 = vld [vmem:[%s245_s24] ss:$8 sps:$4 sm:$0xff] (!%p237_p9)   ;;  %p300_p11 = scmp.lt.s32.totalorder (!%p237_p9), %s605_s15, 3  ;;  %p309_p12 = scmp.lt.s32.totalorder (!%p237_p9), %s715_s17, 1 }
  0x21   : > { %341 = vmatprep.subr.bf16.mxu0 (!%p237_p9), %v674_v3 }
  0x22   : > { %342 = vmatpush1.bf16.msra.mxu0 (!%p237_p9), %v676_v4 }
  0x25   : > { %s882_s18 = smov (!%p292_p10, %s719_s18), 3  ;;  %s884_s15 = smov (!%p300_p11, %s605_s15), 3 }
  0x26   : > { %s604_s25 = sshll.u32 %s882_s18, 2  ;;  %s886_s17 = smov (!%p309_p12, %s715_s17), 1 }
  0x27   : > { %s295_s29 = scalar_lea.vmem %s864_s0, %s604_s25  ;;  %s303_s30 = sadd.s32 %s604_s25, %s884_s15 }
  0x28   : > { %v324_v5 = vld [vmem:[%s295_s29] sm:$0xf]  ;;  %s607_s5 = sshll.u32 %s303_s30, 3  ;;  %s608_s9 = sshll.u32 %s882_s18, 1 }
  0x29   : > { %614 = vmatmul.mubr.msk.bf16.vlgmr.msra.gmra.mrb[0].mxu0 %vm337_vm0, %v324_v5  ;;  %s305_s8 = scalar_lea.vmem %s866_s2, %s607_s5  ;;  %s312_s10 = sadd.s32 %s608_s9, %s886_s17 }
  0x2a   : > { %s609_s11 = sshll.u32 %s312_s10, 3 }
  0x2b   : > { %s314_s14 = scalar_lea.vmem %s867_s3, %s609_s11  ;;  %s322_s26 = scalar_lea.vmem %s868_s4, %s609_s11 }
  0xfc   : > { %v375_v6 = vpop.f32.mrb[0].mxu0 }
  0xfd   : > { %382 = vst [vmem:[%s305_s8] sm:$0xff] %v375_v6  ;;  %v377_v7 = vpop.f32.mrb[1].mxu0  ;;  %v389_v8 = vmul.f32 %v375_v6, %v375_v6 }
  0xfe   : > { %383 = vst [vmem:[%s305_s8 + $0x8] sm:$0xff] %v377_v7  ;;  %v379_v9 = vpop.f32.mrb[2].mxu0  ;;  %v384_v10 = vadd.f32 %v377_v7, %v375_v6  ;;  %v390_v11 = vmul.f32 %v377_v7, %v377_v7 }
  0xff   : > { %v380_v12 = vpop.f32.mrb[3].mxu0 }
 0x100   : > { %385 = vadd.xlane.f32.xlu0 %v384_v10  ;;  %v391_v13 = vadd.f32 %v390_v11, %v389_v8 }
 0x104   : > { %392 = vadd.xlane.f32.xlu0 %v391_v13 }
 0x18d   : > { %v386_v14 = vpop.xlane.xlu0 %385 }
 0x18e   : > { %388 = vst.msk [vmem:[%s314_s14] sm:$0xff] %vm387_vm1, %v386_v14 }
 0x191   : > { %v393_v15 = vpop.xlane.xlu0 %392 }
 0x192   : > { %394 = vst.msk [vmem:[%s322_s26] sm:$0xff] %vm387_vm1, %v393_v15 }
 0x193 PF: > { %s15_s21 = sadd.s32 1, %s731_s21   ;;  %s869_s15 = smov %s711_s16 }
 0x194   : > { %p12_p13 = scmp.ge.s32.totalorder %s15_s21, 10   ;;  %s870_s16 = smov %s810_s28 }
 0x195   : > { %s871_s17 = smov %s723_s19  ;;  %s872_s18 = smov %s727_s20 }
 0x196   : > { %s873_s19 = smov %s876_s22  ;;  %s874_s20 = smov %s880_s23 }
 0x197   :  { %14 = sbr.rel (!%p12_p13) target bundleno = 4 (0x4), region = 128 }

// kernel: conv_trans_block.3
= control target key start
LH: loop header
LB: loop body
LE: loop exit
PB: predicated region body
PF: predicated region fallthrough
CT: control target
= control target key end

     0   :  { %s438_s12 = smov 0   ;;  %s440_s13 = smov 0   ;;  %s495_s0 = inlined_call_operand.vmem [shape: f32[4,8,512], index: 0, kind: input, shape index: {}]   ;;  %s496_s1 = inlined_call_operand.vmem [shape: f32[8,1], index: 1, kind: input, shape index: {}]   ;;  %s497_s2 = inlined_call_operand.vmem [shape: f32[8,1], index: 2, kind: input, shape index: {}]   ;;  %s498_s3 = inlined_call_operand.vmem [shape: f32[4,8,512], index: 3, kind: output, shape index: {}]  }
   0x1   :  { %s442_s14 = smov 0   ;;  %s444_s15 = smov 0  }
   0x2   :  { %s446_s16 = smov 0  }
   0x3 LB: > { %s22_s17 = sadd.s32 1, %s407_s14  ;;  %s25_s18 = sadd.s32 1, %s411_s15  ;;  %s415_s16 = sphi %s446_s16, %s13_s16   ;;  %s411_s15 = sphi %s444_s15, %s502_s15   ;;  %s407_s14 = sphi %s442_s14, %s501_s14   ;;  %s403_s13 = sphi %s440_s13, %s500_s13   ;;  %s399_s12 = sphi %s438_s12, %s499_s12  }
   0x4   : > { %p23_p0 = scmp.ge.s32.totalorder %s22_s17, 2  ;;  %p326_p1 = scmp.ge.s32.totalorder %s415_s16, 1 }
   0x5   : > { %p158_p2 = scmp.lt.s32.totalorder %s415_s16, 9 }
   0x6   : > { %s504_s17 = smov (%p23_p0, %s22_s17), 0  ;;  %s506_s18 = smov (!%p23_p0, %s25_s18), %s411_s15 }
   0x7   : > { %p159_p3 = pnand %p326_p1, %p158_p2  ;;  %p27_p4 = scmp.ge.s32.totalorder %s506_s18, 4 }
   0x8   : > { %v212_v0 = vld [vmem:[%s496_s1] sm:$0xff] (!%p159_p3)  ;;  %v417_v1 = vmov (!%p159_p3), 0   ;;  %s327_s23 = sshll.u32 (!%p159_p3), %s399_s12, 1  ;;  %p191_p5 = scmp.lt.s32.totalorder (!%p159_p3), %s403_s13, 3 }
   0x9   : > { %s508_s18 = smov (%p27_p4, %s506_s18), 0  ;;  %162 = sbr.rel (%p159_p3) target bundleno = 148 (0x94), region = 32 }
   0xa   : > { %376 = vset.pattern.permute.xlu0 (!%p159_p3), %v417_v1  ;;  %v220_v2 = vld [vmem:[%s497_s2] sm:$0xff] (!%p159_p3)  ;;  %p193_p6 = scmp.lt.s32.totalorder (!%p159_p3), %s327_s23, 3 }
   0xb   : > { %215 = vperm.xlu0 (!%p159_p3), %376, %v212_v0  }
   0xf   : > { %223 = vperm.xlu0 (!%p159_p3), %376, %v220_v2  }
  0x10   : > { %s510_s13 = smov (!%p191_p5, %s403_s13), 3  ;;  %s512_s23 = smov (!%p193_p6, %s327_s23), 3 }
  0x11   : > { %s328_s24 = sshll.u32 %s510_s13, 2 }
  0x12   : > { %s196_s25 = sadd.s32 %s328_s24, %s512_s23 }
  0x13   : > { %s329_s26 = sshll.u32 %s196_s25, 3 }
  0x14   : > { %s198_s29 = scalar_lea.vmem %s495_s0, %s329_s26  ;;  %s208_s5 = scalar_lea.vmem %s498_s3, %s329_s26 }
  0x15   : > { %v210_v4 = vld [vmem:[%s198_s29] sm:$0xff]  ;;  %v211_v5 = vld [vmem:[%s198_s29 + $0x8] sm:$0xff] }
  0x8a   : > { %v216_v3 = vpop.permute.xlu0 %215 }
  0x8b   : > { %v218_v6 = vmul.f32 %v216_v3, %v210_v4  ;;  %v219_v7 = vmul.f32 %v216_v3, %v211_v5 }
  0x8e   : > { %v224_v8 = vpop.permute.xlu0 %223 }
  0x8f   : > { %v226_v9 = vadd.f32 %v224_v8, %v218_v6  ;;  %v227_v10 = vadd.f32 %v224_v8, %v219_v7 }
  0x91   : > { %v228_v11 = vmax.f32 %v226_v9, 0.0  ;;  %v229_v12 = vmax.f32 %v227_v10, 0.0 }
  0x93   : > { %230 = vst [vmem:[%s208_s5] sm:$0xff] %v228_v11  ;;  %231 = vst [vmem:[%s208_s5 + $0x8] sm:$0xff] %v229_v12 }
  0x94 PF: > { %s13_s16 = sadd.s32 1, %s415_s16   ;;  %s499_s12 = smov %s407_s14 }
  0x95   : > { %p10_p7 = scmp.ge.s32.totalorder %s13_s16, 10   ;;  %s500_s13 = smov %s411_s15 }
  0x96   : > { %s501_s14 = smov %s504_s17  ;;  %s502_s15 = smov %s508_s18 }
  0x97   :  { %12 = sbr.rel (!%p10_p7) target bundleno = 3 (0x3), region = 62 }

</bundles_post_ra>
